<compile_context>
chip_gen: v7x
topology: tpu7x:2x2x1
jax: 0.10.0
libtpu: 0.0.40
codegen_flags: <defaults>
</compile_context>

<pallas_src>
import functools

import jax
import jax.numpy as jnp
from jax.experimental import pallas as pl
from jax.experimental.pallas import tpu as pltpu

_LANES = 128


def _round_up(n, m):
    return ((n + m - 1) // m) * m


def _elu(x):
    # ELU(alpha=1): x if x > 0 else exp(x) - 1   (arg clamped to avoid overflow)
    # TODO(synk): PyTorch uses expm1; exp(x)-1 differs only at f32 ULP level.
    return jnp.where(x > 0, x, jnp.exp(jnp.minimum(x, 0.0)) - 1.0)


def _mlp_kernel(num_layers, x_ref, *refs):
    """Fused MLP: (matmul + bias + ELU) x (L-1), then the final Linear(->1) as a
    trans-B matmul yielding a lane-dense (1, batch_tile) output row."""
    param_refs = refs[:-1]          # (w0, b0, w1, b1, ..., wL, bL)
    o_ref = refs[-1]                # (1, batch_tile)

    h = x_ref[...]                  # f32 (batch_tile, F)
    for k in range(num_layers - 1):
        w = param_refs[2 * k][...]          # (in_pad, out_pad)  bf16/f32
        b = param_refs[2 * k + 1][...]      # (1, out_pad)       f32
        h = jnp.dot(h.astype(w.dtype), w,
                    preferred_element_type=jnp.float32) + b
        h = _elu(h)                          # f32

    w_last = param_refs[-2][...]             # (1, K_pad)  bf16/f32
    b_last = param_refs[-1][...]             # (1, 1)      f32
    # (1, K) contracted with (batch_tile, K) on K  ->  (1, batch_tile) row.
    row = jax.lax.dot_general(
        w_last, h.astype(w_last.dtype),
        dimension_numbers=(((1,), (1,)), ((), ())),
        preferred_element_type=jnp.float32)
    o_ref[...] = (row + b_last).astype(o_ref.dtype)


def _pick_batch_tile(batch):
    """Largest 128-multiple tile that still leaves >= 2 grid steps (so the
    pipeline can double-buffer / shard across cores); else a single full-batch
    step for tiny batches (latency-bound anyway)."""
    candidates = [t for t in (1024, 512, 256, 128) if batch % t == 0]
    for t in candidates:
        if batch // t >= 2:
            return t
    return candidates[0] if candidates else batch


def _prepare_params(weights, biases, compute_dtype):
    """Zero-pad hidden widths to 128 lanes, cast matmul operands to
    `compute_dtype`, keep biases in f32, store the final weight as a (1, K) row."""
    num_layers = len(weights)
    prepped = []
    prev_out_pad = None
    for k, (w, b) in enumerate(zip(weights, biases)):
        in_dim, out_dim = w.shape
        b = jnp.reshape(b, (1, out_dim)).astype(jnp.float32)
        last = k == num_layers - 1
        in_pad = in_dim if k == 0 else prev_out_pad
        out_pad = out_dim if last else _round_up(out_dim, _LANES)
        w_p = jnp.pad(w.astype(jnp.float32),
                      ((0, in_pad - in_dim), (0, out_pad - out_dim)))
        b_p = jnp.pad(b, ((0, 0), (0, out_pad - out_dim)))
        if last:
            w_p = w_p.T                      # (1, K_pad) row for trans-B matmul
        prepped.append((w_p.astype(compute_dtype), b_p))
        prev_out_pad = out_pad
    return prepped


def discriminator_forward(x, weights, biases, *, batch_tile=None, use_bf16=True):
    """Run the Discriminator MLP with a single fused Pallas kernel.

    x:        (B, input_size) float32
    weights:  list of (in_k, out_k) float32 arrays (transposed vs PyTorch's (out, in))
    biases:   list of (out_k,) or (1, out_k) float32 arrays
    """
    B, F = x.shape
    num_layers = len(weights)
    assert weights[-1].shape[1] == 1, "Discriminator's final Linear must have out_features=1"

    if batch_tile is None:
        batch_tile = _pick_batch_tile(B)
    if batch_tile != B:
        assert B % batch_tile == 0, "batch must be divisible by batch_tile"
        assert batch_tile % 8 == 0, "batch_tile must be a multiple of 8"
        assert batch_tile % _LANES == 0, "batch_tile must be a multiple of 128 (or == B)"

    compute_dtype = jnp.bfloat16 if use_bf16 else jnp.float32
    prepped = _prepare_params(weights, biases, compute_dtype)

    grid = (B // batch_tile,)

    # x is tiled over the batch; the (small, constant-index) params are loaded whole.
    in_specs = [pl.BlockSpec((batch_tile, F), lambda i: (i, 0))]
    flat_params = []
    for w_p, b_p in prepped:
        in_specs.append(pl.BlockSpec(w_p.shape, lambda i: (0, 0)))
        in_specs.append(pl.BlockSpec(b_p.shape, lambda i: (0, 0)))
        flat_params.extend([w_p, b_p])

    # Lane-dense output: one (1, batch_tile) row per grid step into a (1, B)
    # buffer; reshaped to (B, 1) below.
    out_spec = pl.BlockSpec((1, batch_tile), lambda i: (0, i))

    kernel = functools.partial(_mlp_kernel, num_layers)

    out = pl.pallas_call(
        kernel,
        out_shape=jax.ShapeDtypeStruct((1, B), jnp.float32),
        grid_spec=pltpu.PrefetchScalarGridSpec(
            num_scalar_prefetch=0,
            grid=grid,
            in_specs=in_specs,
            out_specs=out_spec,
        ),
        compiler_params=pltpu.CompilerParams(
            dimension_semantics=("parallel",),
            vmem_limit_bytes=32 * 1024 * 1024,
        ),
    )(x, *flat_params)

    return out.reshape(B, 1)


def init_discriminator_params(key, input_size, layers):
    """Deterministic synthetic parameters matching nn.Linear shapes."""
    in_features = [input_size] + list(layers)
    out_features = list(layers) + [1]
    weights, biases = [], []
    for i, o in zip(in_features, out_features):
        key, kw, kb = jax.random.split(key, 3)
        # PyTorch weight is (o, i); store transposed (i, o) for the kernel.
        w = jax.random.normal(kw, (i, o), dtype=jnp.float32) * (1.0 / jnp.sqrt(i))
        b = jax.random.normal(kb, (1, o), dtype=jnp.float32) * 0.01
        weights.append(w)
        biases.append(b)
    return weights, biases


def _reference_forward(x, weights, biases, use_bf16=True):
    """Plain-JAX reference mirroring the kernel's numerics (bf16 operands,
    f32 accumulation, f32 bias/ELU)."""
    dt = jnp.bfloat16 if use_bf16 else jnp.float32
    h = x
    for k, (w, b) in enumerate(zip(weights, biases)):
        b = jnp.reshape(b, (1, -1)).astype(jnp.float32)
        h = jnp.dot(h.astype(dt), w.astype(dt),
                    preferred_element_type=jnp.float32) + b
        if k != len(weights) - 1:
            h = jnp.where(h > 0, h, jnp.exp(jnp.minimum(h, 0.0)) - 1.0)
    return h


if __name__ == "__main__":
    key = jax.random.PRNGKey(0)

    # Discriminator(input_size=32, layers=[64, 32]); batch 512 -> tile 256, 2 grid steps.
    input_size = 32
    layers = [64, 32]
    batch = 512

    key, kx = jax.random.split(key)
    x = jax.random.normal(kx, (batch, input_size), dtype=jnp.float32)

    weights, biases = init_discriminator_params(key, input_size, layers)

    out = discriminator_forward(x, weights, biases)
    out = jax.block_until_ready(out)
    assert out.shape == (batch, 1), out.shape

    ref = _reference_forward(x, weights, biases, use_bf16=True)
    max_err = float(jnp.max(jnp.abs(out - ref)))
    assert jnp.allclose(out, ref, atol=2e-3, rtol=2e-3), (
        "mismatch vs reference: max abs err = %e" % max_err
    )

    print("KERNEL_OK")
</pallas_src>

<mosaic_0001>
module attributes {stable_mosaic.version = 11 : i64} {
  func.func @_mlp_kernel(%arg0: i32, %arg1: memref<256x32xf32, #tpu.memory_space<vmem>>, %arg2: memref<32x128xbf16, #tpu.memory_space<vmem>>, %arg3: memref<1x128xf32, #tpu.memory_space<vmem>>, %arg4: memref<128x128xbf16, #tpu.memory_space<vmem>>, %arg5: memref<1x128xf32, #tpu.memory_space<vmem>>, %arg6: memref<1x128xbf16, #tpu.memory_space<vmem>>, %arg7: memref<1x1xf32, #tpu.memory_space<vmem>>, %arg8: memref<1x256xf32, #tpu.memory_space<vmem>>) attributes {dimension_semantics = [#tpu.dimension_semantics<parallel>], iteration_bounds = array<i64: 2>, scalar_prefetch = 0 : i64, scratch_operands = 0 : i64, tpu.core_type = #tpu.core_type<tc>, window_params = [{transform_indices = @transform_0, window_bounds = array<i64: 256, 32>}, {pipeline_mode = #tpu.pipeline_mode<synchronous>, transform_indices = @transform_1, window_bounds = array<i64: 32, 128>}, {pipeline_mode = #tpu.pipeline_mode<synchronous>, transform_indices = @transform_2, window_bounds = array<i64: 1, 128>}, {pipeline_mode = #tpu.pipeline_mode<synchronous>, transform_indices = @transform_3, window_bounds = array<i64: 128, 128>}, {pipeline_mode = #tpu.pipeline_mode<synchronous>, transform_indices = @transform_4, window_bounds = array<i64: 1, 128>}, {pipeline_mode = #tpu.pipeline_mode<synchronous>, transform_indices = @transform_5, window_bounds = array<i64: 1, 128>}, {pipeline_mode = #tpu.pipeline_mode<synchronous>, transform_indices = @transform_6, window_bounds = array<i64: 1, 1>}, {transform_indices = @transform_7, window_bounds = array<i64: 1, 256>}]} {
    %c0 = arith.constant 0 : index
    %c0_0 = arith.constant 0 : index
    %0 = vector.load %arg1[%c0, %c0_0] : memref<256x32xf32, #tpu.memory_space<vmem>>, vector<256x32xf32>
    %c0_1 = arith.constant 0 : index
    %c0_2 = arith.constant 0 : index
    %1 = vector.load %arg2[%c0_1, %c0_2] : memref<32x128xbf16, #tpu.memory_space<vmem>>, vector<32x128xbf16>
    %c0_3 = arith.constant 0 : index
    %c0_4 = arith.constant 0 : index
    %2 = vector.load %arg3[%c0_3, %c0_4] : memref<1x128xf32, #tpu.memory_space<vmem>>, vector<1x128xf32>
    %3 = arith.truncf %0 : vector<256x32xf32> to vector<256x32xbf16>
    %cst = arith.constant dense<0.000000e+00> : vector<256x128xf32>
    %4 = tpu.matmul %3, %1, %cst {dimension_numbers = #tpu.dot_dimension_numbers<[1], [0], [0], [1], [0, 0, 1, 1], [], []>} : vector<256x32xbf16>, vector<32x128xbf16>, vector<256x128xf32> -> vector<256x128xf32>
    %5 = vector.broadcast %2 : vector<1x128xf32> to vector<256x128xf32>
    %6 = arith.addf %4, %5 : vector<256x128xf32>
    %cst_5 = arith.constant 0.000000e+00 : f32
    %7 = vector.broadcast %cst_5 : f32 to vector<256x128xf32>
    %8 = arith.cmpf ogt, %6, %7 : vector<256x128xf32>
    %cst_6 = arith.constant 0.000000e+00 : f32
    %9 = vector.broadcast %cst_6 : f32 to vector<256x128xf32>
    %10 = arith.minimumf %6, %9 : vector<256x128xf32>
    %11 = math.exp %10 : vector<256x128xf32>
    %cst_7 = arith.constant 1.000000e+00 : f32
    %12 = vector.broadcast %cst_7 : f32 to vector<256x128xf32>
    %13 = arith.subf %11, %12 : vector<256x128xf32>
    %14 = arith.select %8, %6, %13 : vector<256x128xi1>, vector<256x128xf32>
    %c0_8 = arith.constant 0 : index
    %c0_9 = arith.constant 0 : index
    %15 = vector.load %arg4[%c0_8, %c0_9] : memref<128x128xbf16, #tpu.memory_space<vmem>>, vector<128x128xbf16>
    %c0_10 = arith.constant 0 : index
    %c0_11 = arith.constant 0 : index
    %16 = vector.load %arg5[%c0_10, %c0_11] : memref<1x128xf32, #tpu.memory_space<vmem>>, vector<1x128xf32>
    %17 = arith.truncf %14 : vector<256x128xf32> to vector<256x128xbf16>
    %cst_12 = arith.constant dense<0.000000e+00> : vector<256x128xf32>
    %18 = tpu.matmul %17, %15, %cst_12 {dimension_numbers = #tpu.dot_dimension_numbers<[1], [0], [0], [1], [0, 0, 1, 1], [], []>} : vector<256x128xbf16>, vector<128x128xbf16>, vector<256x128xf32> -> vector<256x128xf32>
    %19 = vector.broadcast %16 : vector<1x128xf32> to vector<256x128xf32>
    %20 = arith.addf %18, %19 : vector<256x128xf32>
    %cst_13 = arith.constant 0.000000e+00 : f32
    %21 = vector.broadcast %cst_13 : f32 to vector<256x128xf32>
    %22 = arith.cmpf ogt, %20, %21 : vector<256x128xf32>
    %cst_14 = arith.constant 0.000000e+00 : f32
    %23 = vector.broadcast %cst_14 : f32 to vector<256x128xf32>
    %24 = arith.minimumf %20, %23 : vector<256x128xf32>
    %25 = math.exp %24 : vector<256x128xf32>
    %cst_15 = arith.constant 1.000000e+00 : f32
    %26 = vector.broadcast %cst_15 : f32 to vector<256x128xf32>
    %27 = arith.subf %25, %26 : vector<256x128xf32>
    %28 = arith.select %22, %20, %27 : vector<256x128xi1>, vector<256x128xf32>
    %c0_16 = arith.constant 0 : index
    %c0_17 = arith.constant 0 : index
    %29 = vector.load %arg6[%c0_16, %c0_17] : memref<1x128xbf16, #tpu.memory_space<vmem>>, vector<1x128xbf16>
    %c0_18 = arith.constant 0 : index
    %c0_19 = arith.constant 0 : index
    %30 = vector.load %arg7[%c0_18, %c0_19] : memref<1x1xf32, #tpu.memory_space<vmem>>, vector<1x1xf32>
    %31 = arith.truncf %28 : vector<256x128xf32> to vector<256x128xbf16>
    %cst_20 = arith.constant dense<0.000000e+00> : vector<1x256xf32>
    %32 = tpu.matmul %29, %31, %cst_20 {dimension_numbers = #tpu.dot_dimension_numbers<[1], [1], [0], [0], [0, 0, 1, 0], [], []>} : vector<1x128xbf16>, vector<256x128xbf16>, vector<1x256xf32> -> vector<1x256xf32>
    %33 = vector.broadcast %30 : vector<1x1xf32> to vector<1x256xf32>
    %34 = arith.addf %32, %33 : vector<1x256xf32>
    %c0_21 = arith.constant 0 : index
    %c0_22 = arith.constant 0 : index
    %35 = vector.load %arg8[%c0_21, %c0_22] : memref<1x256xf32, #tpu.memory_space<vmem>>, vector<1x256xf32>
    tpu.vector_store %arg8[%c0_21, %c0_22], %34 {strides = array<i32>} : memref<1x256xf32, #tpu.memory_space<vmem>>, vector<1x256xf32>,
    return
  }
  func.func @transform_0(%arg0: i32) -> (i32, i32) {
    %c0_i32 = arith.constant 0 : i32
    %c0_i32_0 = arith.constant 0 : i32
    return %arg0, %c0_i32 : i32, i32
  }
  func.func @transform_1(%arg0: i32) -> (i32, i32) {
    %c0_i32 = arith.constant 0 : i32
    %c0_i32_0 = arith.constant 0 : i32
    %c0_i32_1 = arith.constant 0 : i32
    return %c0_i32, %c0_i32_0 : i32, i32
  }
  func.func @transform_2(%arg0: i32) -> (i32, i32) {
    %c0_i32 = arith.constant 0 : i32
    %c0_i32_0 = arith.constant 0 : i32
    %c0_i32_1 = arith.constant 0 : i32
    return %c0_i32, %c0_i32_0 : i32, i32
  }
  func.func @transform_3(%arg0: i32) -> (i32, i32) {
    %c0_i32 = arith.constant 0 : i32
    %c0_i32_0 = arith.constant 0 : i32
    %c0_i32_1 = arith.constant 0 : i32
    return %c0_i32, %c0_i32_0 : i32, i32
  }
  func.func @transform_4(%arg0: i32) -> (i32, i32) {
    %c0_i32 = arith.constant 0 : i32
    %c0_i32_0 = arith.constant 0 : i32
    %c0_i32_1 = arith.constant 0 : i32
    return %c0_i32, %c0_i32_0 : i32, i32
  }
  func.func @transform_5(%arg0: i32) -> (i32, i32) {
    %c0_i32 = arith.constant 0 : i32
    %c0_i32_0 = arith.constant 0 : i32
    %c0_i32_1 = arith.constant 0 : i32
    return %c0_i32, %c0_i32_0 : i32, i32
  }
  func.func @transform_6(%arg0: i32) -> (i32, i32) {
    %c0_i32 = arith.constant 0 : i32
    %c0_i32_0 = arith.constant 0 : i32
    %c0_i32_1 = arith.constant 0 : i32
    return %c0_i32, %c0_i32_0 : i32, i32
  }
  func.func @transform_7(%arg0: i32) -> (i32, i32) {
    %c0_i32 = arith.constant 0 : i32
    %c0_i32_0 = arith.constant 0 : i32
    return %c0_i32, %arg0 : i32, i32
  }
}

</mosaic_0001>

<bundles_post_ra>
// kernel: tpu_custom_call.1
= control target key start
LH: loop header
LB: loop body
LE: loop exit
PB: predicated region body
PF: predicated region fallthrough
CT: control target
= control target key end

     0   :  { %s2566_s0 = inlined_call_operand.vmem [shape: f32[512,32], index: 0, kind: input, shape index: {}]   ;;  %s2567_s1 = inlined_call_operand.vmem [shape: bf16[32,128], index: 1, kind: input, shape index: {}]   ;;  %s2568_s2 = inlined_call_operand.vmem [shape: f32[1,128], index: 2, kind: input, shape index: {}]   ;;  %s2569_s3 = inlined_call_operand.vmem [shape: bf16[128,128], index: 3, kind: input, shape index: {}]   ;;  %s2570_s4 = inlined_call_operand.vmem [shape: f32[1,128], index: 4, kind: input, shape index: {}]   ;;  %s2571_s5 = inlined_call_operand.vmem [shape: bf16[1,128], index: 5, kind: input, shape index: {}]   ;;  %s2572_s6 = inlined_call_operand.<no memory space> [shape: f32[1,1], index: 6, kind: input, shape index: {}]   ;;  %s2573_s7 = inlined_call_operand.hbm [shape: f32[1,512], index: 7, kind: output, shape index: {}]  }
   0x1   :  { %v12_v0 = vstv %s2572_s6 }
   0x2   :  { %13 = vst [vmem:[#allocation2] sm:$0x1] %v12_v0 }
   0x3   :  { %14 = vsyncpa [#allocation4], 0 }
   0x4   :  { %16 = vsyncpa [#allocation4 + $0x1], 0  ;;  %s1900_s26 = smov 0   ;;  %s1902_s27 = smov 0  }
   0x5   :  { %s1904_s28 = smov 0   ;;  %s1906_s29 = smov 0  }
   0x6 LB: > { %s1360_s6 = sadd.s32 4294967295, %s1852_s29   ;;  %s1361_s30 = sadd.s32 4294967294, %s1852_s29   ;;  %s1852_s29 = sphi %s1906_s29, %s2579_s29   ;;  %s1848_s28 = sphi %s1904_s28, %s2578_s28   ;;  %s1844_s27 = sphi %s1902_s27, %s2577_s27   ;;  %s1840_s26 = sphi %s1900_s26, %s2576_s26  }
   0x7   : > { %s1923_s8 = sadd.s32 1, %s1852_s29   ;;  %s181_s9 = sadd.s32 1, %s1848_s28 }
   0x8   : > { %s178_s10 = ssub.s32 %s1852_s29, %s1923_s8  ;;  %p191_p0 = scmp.ne.s32.totalorder %s1848_s28, %s1844_s27 }
   0x9   : > { %p179_p1 = scmp.eq.s32.totalorder %s178_s10, 0  ;;  %p192_p2 = scmp.eq.s32.totalorder %s1360_s6, 1 }
   0xa   : > { %p197_p3 = scmp.ne.s32.totalorder %s1844_s27, %s1840_s26  ;;  %p198_p4 = scmp.eq.s32.totalorder %s1361_s30, 1 }
   0xb   : > { %s1933_s11 = scalar_select %p179_p1, %s1848_s28, %s181_s9  }
   0xc   : > { %p1935_p5 = por %p192_p2, %p191_p0  ;;  %p1939_p6 = por %p198_p4, %p197_p3 }
   0xd   : > { %p1364_p7 = scmp.ge.s32.totalorder %s1852_s29, 1  ;;  %p243_p8 = scmp.lt.s32.totalorder %s1852_s29, 3 }
   0xf   : > { %p244_p9 = pnand %p1364_p7, %p243_p8 }
  0x10   : > { %v1652_v1 = vld [vmem:[%s2567_s1] sm:$0xff] (!%p244_p9)   ;;  %s1948_s16 = sshll.u32 (!%p244_p9), %s1360_s6, 5  ;;  %v1653_v2 = vld [vmem:[%s2567_s1 + $0x8] sm:$0xff] (!%p244_p9)   ;;  %vm354_vm0 = vcmask (!%p244_p9), 261120   ;;  %v1656_v53 = vld [vmem:[%s2569_s3 + $0x10] sm:$0xff] (!%p244_p9)   ;;  %s272_s15 = sand.u32 (!%p244_p9), 1, %s1844_s27  }
  0x11   : > { %247 = sbr.rel (%p244_p9) target bundleno = 839 (0x347), region = 48  ;;  %p276_p10 = scmp.lt.s32.totalorder (!%p244_p9), %s1948_s16, 63  ;;  %1526 = vmatprep.subr.bf16.mxu0 (!%p244_p9), %v1652_v1  ;;  %v1654_v3 = vld [vmem:[%s2569_s3] sm:$0xff] (!%p244_p9)   ;;  %v1655_v4 = vld [vmem:[%s2569_s3 + $0x8] sm:$0xff] (!%p244_p9)   ;;  %v1657_v54 = vld [vmem:[%s2569_s3 + $0x18] sm:$0xff] (!%p244_p9)  }
  0x12   : > { %1527 = vmatpush3.bf16.msra.mxu0 (!%p244_p9), %v1652_v1  ;;  %1562 = vmatprep.subr.bf16.mxu1 (!%p244_p9), %v1654_v3  ;;  %v1658_v55 = vld [vmem:[%s2569_s3 + $0x20] sm:$0xff] (!%p244_p9)   ;;  %v1659_v56 = vld [vmem:[%s2569_s3 + $0x28] sm:$0xff] (!%p244_p9)   ;;  %v1660_v57 = vld [vmem:[%s2569_s3 + $0x30] sm:$0xff] (!%p244_p9)   ;;  %s1365_s17 = sshll.u32 (!%p244_p9), %s272_s15, 1  ;;  %s2524_s22 = scalar_lea.hbm (!%p244_p9), %s2573_s7, %s1948_s16 }
  0x13   : > { %1528 = vmatprep.subr.bf16.mxu0 (!%p244_p9), %v1653_v2  ;;  %1563 = vmatpush3.bf16.msra.mxu1 (!%p244_p9), %v1654_v3  ;;  %v1661_v58 = vld [vmem:[%s2569_s3 + $0x38] sm:$0xff] (!%p244_p9)   ;;  %v2035_v59 = vld [vmem:[%s2568_s2] ss:$0 sm:$0xff] (!%p244_p9)  ;;  %s274_s18 = scalar_lea.vmem (!%p244_p9), [#allocation3], %s1365_s17  ;;  %s1288_s23 = scalar_lea.sflag (!%p244_p9), [#allocation4], %s272_s15 }
  0x14   : > { %1564 = vmatprep.subr.bf16.mxu1 (!%p244_p9), %v1655_v4  ;;  %s1302_s19 = sshll.u32 (!%p244_p9), %s274_s18, 4  ;;  %s1856_s25 = smov (!%p244_p9), [#allocation3]   ;;  %s2526_s19 = int_to_ptr.vmem [resolvable:$true] %s1302_s19 }
  0x15   : > { %s1794_s6 = sshll.u32 (!%p244_p9), %s1856_s25, 4  ;;  %s1795_s6 = int_to_ptr.vmem [resolvable:$false] %s1794_s6 }
  0x16   : > { %1529 = vmatpush3.bf16.msra.mxu0 (!%p244_p9), %v1653_v2  ;;  %p1797_p0 = scmp.lt.s32.totalorder (!%p244_p9), %s2526_s19, %s1795_s6 }
  0x17   : > { %1565 = vmatpush3.bf16.msra.mxu1 (!%p244_p9), %v1655_v4 }
  0x18   : > { %s277_s21 = scalar_select %p276_p10, %s1948_s16, 63  ;;  %1566 = vmatprep.subr.bf16.mxu1 %v1656_v53 }
  0x1a   : > { %s1367_s24 = sshll.u32 %s277_s21, 3 }
  0x1b   : > { %s1964_s30 = scalar_lea.vmem %s2566_s0, %s1367_s24  ;;  %1567 = vmatpush3.bf16.msra.mxu1 %v1656_v53  ;;  %s1790_s24 = scalar_lea.vmem %s2526_s19, 32 }
  0x1c   : > { %v283_v5 = vld [vmem:[%s1964_s30] sm:$0xff]  ;;  %v284_v6 = vld [vmem:[%s1964_s30 + $0x8] sm:$0xff]  ;;  %v285_v7 = vld [vmem:[%s1964_s30 + $0x10] sm:$0xff]  ;;  %1568 = vmatprep.subr.bf16.mxu1 %v1657_v54  ;;  %p1791_p11 = scmp.ne.s32.totalorder %s2526_s19, %s1790_s24 }
  0x1d   : > { %v320_v8 = vpack.c.bf16 %v284_v6, %v283_v5  ;;  %v286_v9 = vld [vmem:[%s1964_s30 + $0x18] sm:$0xff]  ;;  %v287_v10 = vld [vmem:[%s1964_s30 + $0x20] sm:$0xff]  ;;  %v288_v11 = vld [vmem:[%s1964_s30 + $0x28] sm:$0xff] }
  0x1e   : > { %v321_v12 = vpack.c.bf16 %v286_v9, %v285_v7  ;;  %v322_v13 = vpack.c.bf16 %v288_v11, %v287_v10  ;;  %v289_v14 = vld [vmem:[%s1964_s30 + $0x30] sm:$0xff]  ;;  %v290_v15 = vld [vmem:[%s1964_s30 + $0x38] sm:$0xff]  ;;  %v291_v16 = vld [vmem:[%s1964_s30 + $0x40] sm:$0xff]  ;;  %p1792_p12 = pnand %p1791_p11, %p1935_p5 }
  0x1f   : > { %1530 = vmatprep.mubr.msk.bf16.mxu0 %vm354_vm0, %v320_v8  ;;  %v292_v17 = vld [vmem:[%s1964_s30 + $0x48] sm:$0xff]  ;;  %v323_v18 = vpack.c.bf16 %v290_v15, %v289_v14  ;;  %v293_v20 = vld [vmem:[%s1964_s30 + $0x50] sm:$0xff]  ;;  %v294_v21 = vld [vmem:[%s1964_s30 + $0x58] sm:$0xff]  ;;  %1569 = vmatpush3.bf16.msra.mxu1 %v1657_v54 }
  0x20   : > { %1531 = vmatmul.mubr.msk.bf16.vlgmr.msra.gmra.mrb[0].mxu0 %vm354_vm0, %v321_v12  ;;  %v324_v19 = vpack.c.bf16 %v292_v17, %v291_v16  ;;  %v295_v22 = vld [vmem:[%s1964_s30 + $0x60] sm:$0xff]  ;;  %v296_v23 = vld [vmem:[%s1964_s30 + $0x68] sm:$0xff]  ;;  %v325_v24 = vpack.c.bf16 %v294_v21, %v293_v20  ;;  %v297_v26 = vld [vmem:[%s1964_s30 + $0x70] sm:$0xff]  ;;  %1570 = vmatprep.subr.bf16.mxu1 %v1658_v55  ;;  %p1793_p13 = pneg %p1792_p12 }
  0x21   : > { %1534 = vmatprep.mubr.msk.bf16.mxu0 %vm354_vm0, %v322_v13  ;;  %v326_v25 = vpack.c.bf16 %v296_v23, %v295_v22  ;;  %v298_v27 = vld [vmem:[%s1964_s30 + $0x78] sm:$0xff]  ;;  %v299_v28 = vld [vmem:[%s1964_s30 + $0x80] sm:$0xff]  ;;  %v300_v29 = vld [vmem:[%s1964_s30 + $0x88] sm:$0xff] }
  0x22   : > { %v327_v30 = vpack.c.bf16 %v298_v27, %v297_v26  ;;  %v328_v31 = vpack.c.bf16 %v300_v29, %v299_v28  ;;  %v301_v32 = vld [vmem:[%s1964_s30 + $0x90] sm:$0xff]  ;;  %v302_v33 = vld [vmem:[%s1964_s30 + $0x98] sm:$0xff]  ;;  %v303_v34 = vld [vmem:[%s1964_s30 + $0xa0] sm:$0xff] }
  0x23   : > { %v304_v35 = vld [vmem:[%s1964_s30 + $0xa8] sm:$0xff]  ;;  %v329_v36 = vpack.c.bf16 %v302_v33, %v301_v32  ;;  %v305_v38 = vld [vmem:[%s1964_s30 + $0xb0] sm:$0xff]  ;;  %v306_v39 = vld [vmem:[%s1964_s30 + $0xb8] sm:$0xff]  ;;  %1571 = vmatpush3.bf16.msra.mxu1 %v1658_v55 }
  0x24   : > { %v330_v37 = vpack.c.bf16 %v304_v35, %v303_v34  ;;  %v307_v40 = vld [vmem:[%s1964_s30 + $0xc0] sm:$0xff]  ;;  %v308_v41 = vld [vmem:[%s1964_s30 + $0xc8] sm:$0xff]  ;;  %v331_v42 = vpack.c.bf16 %v306_v39, %v305_v38  ;;  %v309_v44 = vld [vmem:[%s1964_s30 + $0xd0] sm:$0xff]  ;;  %1572 = vmatprep.subr.bf16.mxu1 %v1659_v56 }
  0x25   : > { %v332_v43 = vpack.c.bf16 %v308_v41, %v307_v40  ;;  %v310_v45 = vld [vmem:[%s1964_s30 + $0xd8] sm:$0xff]  ;;  %v311_v46 = vld [vmem:[%s1964_s30 + $0xe0] sm:$0xff]  ;;  %v312_v47 = vld [vmem:[%s1964_s30 + $0xe8] sm:$0xff] }
  0x26   : > { %v333_v48 = vpack.c.bf16 %v310_v45, %v309_v44  ;;  %v334_v49 = vpack.c.bf16 %v312_v47, %v311_v46  ;;  %v313_v50 = vld [vmem:[%s1964_s30 + $0xf0] sm:$0xff]  ;;  %v314_v51 = vld [vmem:[%s1964_s30 + $0xf8] sm:$0xff]  ;;  %s1796_s30 = scalar_lea.vmem %s1795_s6, 64 }
  0x27   : > { %v335_v52 = vpack.c.bf16 %v314_v51, %v313_v50  ;;  %1573 = vmatpush3.bf16.msra.mxu1 %v1659_v56  ;;  %p1798_p1 = scmp.lt.s32.totalorder %s1796_s30, %s1790_s24 }
  0x28   : > { %1535 = vmatmul.mubr.msk.bf16.gmra.mrb[4].mxu0 %vm354_vm0, %v323_v18  ;;  %1574 = vmatprep.subr.bf16.mxu1 %v1660_v57 }
  0x29   : > { %1538 = vmatprep.mubr.msk.bf16.mxu0 %vm354_vm0, %v324_v19  ;;  %p1799_p2 = por %p1798_p1, %p1797_p0 }
  0x2b   : > { %1575 = vmatpush3.bf16.msra.mxu1 %v1660_v57  ;;  %p1800_p3 = pnand %p1799_p2, %p1793_p13 }
  0x2c   : > { %1576 = vmatprep.subr.bf16.mxu1 %v1661_v58 }
  0x2f   : > { %1577 = vmatpush3.bf16.msra.mxu1 %v1661_v58 }
  0x30   : > { %1539 = vmatmul.mubr.msk.bf16.gmra.mrb[8].mxu0 %vm354_vm0, %v325_v24 }
  0x31   : > { %1542 = vmatprep.mubr.msk.bf16.mxu0 %vm354_vm0, %v326_v25 }
  0x38   : > { %1543 = vmatmul.mubr.msk.bf16.gmra.mrb[12].mxu0 %vm354_vm0, %v327_v30 }
  0x39   : > { %1546 = vmatprep.mubr.msk.bf16.mxu0 %vm354_vm0, %v328_v31 }
  0x40   : > { %1547 = vmatmul.mubr.msk.bf16.gmra.mrb[16].mxu0 %vm354_vm0, %v329_v36 }
  0x41   : > { %1550 = vmatprep.mubr.msk.bf16.mxu0 %vm354_vm0, %v330_v37 }
  0x48   : > { %1551 = vmatmul.mubr.msk.bf16.gmra.mrb[20].mxu0 %vm354_vm0, %v331_v42 }
  0x49   : > { %1554 = vmatprep.mubr.msk.bf16.mxu0 %vm354_vm0, %v332_v43 }
  0x50   : > { %1555 = vmatmul.mubr.msk.bf16.gmra.mrb[24].mxu0 %vm354_vm0, %v333_v48 }
  0x51   : > { %1558 = vmatprep.mubr.msk.bf16.mxu0 %vm354_vm0, %v334_v49 }
  0x58   : > { %1559 = vmatmul.mubr.msk.bf16.gmra.mrb[28].mxu0 %vm354_vm0, %v335_v52 }
  0xf3   : > { %v1532_v60 = vpop.f32.mrb[0].mxu0 }
  0xf4   : > { %v2038_v61 = vadd.f32 %v1532_v60, %v2035_v59  ;;  %v437_v62 = vpop.f32.mrb[1].mxu0 }
  0xf5   : > { %v2041_v63 = vadd.f32 %v2035_v59, %v437_v62  ;;  %v1533_v0 = vpop.f32.mrb[2].mxu0 }
  0xf6   : > { %v598_v1 = vmin.f32 %v2038_v61, 0.0  ;;  %v2045_v2 = vadd.f32 %v1533_v0, %v2035_v59  ;;  %v440_v3 = vpop.f32.mrb[3].mxu0  ;;  %vm566_vm1 = vcmp.gt.f32.partialorder %v2038_v61, 0.0 }
  0xf7   : > { %v596_v4 = vmin.f32 %v2041_v63, 0.0  ;;  %v441_v5 = vadd.f32 %v2035_v59, %v440_v3  ;;  %vm564_vm2 = vcmp.gt.f32.partialorder %v2041_v63, 0.0 }
  0xf8   : > { %v632_v6 = vmul.f32 1.442695, %v598_v1  ;;  %v599_v7 = vmin.f32 %v2045_v2, 0.0  ;;  %vm567_vm3 = vcmp.gt.f32.partialorder %v2045_v2, 0.0 }
  0xf9   : > { %v628_v8 = vmul.f32 1.442695, %v596_v4  ;;  %v597_v9 = vmin.f32 %v441_v5, 0.0  ;;  %vm565_vm4 = vcmp.gt.f32.partialorder %v441_v5, 0.0 }
  0xfa   : > { %1662 = vpow2.f32 %v632_v6  ;;  %v634_v10 = vmul.f32 1.442695, %v599_v7 }
  0xfb   : > { %1664 = vpow2.f32 %v628_v8  ;;  %v630_v11 = vmul.f32 1.442695, %v597_v9  ;;  %v1536_v12 = vpop.f32.mrb[4].mxu0 }
  0xfc   : > { %1666 = vpow2.f32 %v634_v10  ;;  %v2051_v13 = vadd.f32 %v1536_v12, %v2035_v59  ;;  %v453_v14 = vpop.f32.mrb[5].mxu0 }
  0xfd   : > { %1668 = vpow2.f32 %v630_v11  ;;  %v2054_v15 = vadd.f32 %v2035_v59, %v453_v14  ;;  %v1537_v16 = vpop.f32.mrb[6].mxu0 }
  0xfe   : > { %v602_v17 = vmin.f32 %v2051_v13, 0.0  ;;  %v2058_v18 = vadd.f32 %v1537_v16, %v2035_v59  ;;  %v456_v19 = vpop.f32.mrb[7].mxu0  ;;  %vm570_vm5 = vcmp.gt.f32.partialorder %v2051_v13, 0.0 }
  0xff   : > { %v600_v20 = vmin.f32 %v2054_v15, 0.0  ;;  %v2062_v21 = vadd.f32 %v2035_v59, %v456_v19  ;;  %vm568_vm6 = vcmp.gt.f32.partialorder %v2054_v15, 0.0 }
 0x100   : > { %v640_v22 = vmul.f32 1.442695, %v602_v17  ;;  %v603_v23 = vmin.f32 %v2058_v18, 0.0  ;;  %vm571_vm7 = vcmp.gt.f32.partialorder %v2058_v18, 0.0 }
 0x101   : > { %v636_v24 = vmul.f32 1.442695, %v600_v20  ;;  %v601_v25 = vmin.f32 %v2062_v21, 0.0  ;;  %vm569_vm8 = vcmp.gt.f32.partialorder %v2062_v21, 0.0 }
 0x102   : > { %1670 = vpow2.f32 %v640_v22  ;;  %v642_v26 = vmul.f32 1.442695, %v603_v23 }
 0x103   : > { %1672 = vpow2.f32 %v636_v24  ;;  %v638_v27 = vmul.f32 1.442695, %v601_v25  ;;  %v1540_v28 = vpop.f32.mrb[8].mxu0 }
 0x104   : > { %v1663_v29 = vpop.eup %1662  ;;  %1674 = vpow2.f32 %v642_v26  ;;  %v2067_v30 = vadd.f32 %v1540_v28, %v2035_v59  ;;  %v469_v31 = vpop.f32.mrb[9].mxu0 }
 0x105   : > { %v1665_v32 = vpop.eup %1664  ;;  %1676 = vpow2.f32 %v638_v27  ;;  %v2071_v33 = vadd.f32 %v2035_v59, %v469_v31  ;;  %v1541_v34 = vpop.f32.mrb[10].mxu0  ;;  %v1389_v36 = vadd.f32 -1.0, %v1663_v29 }
 0x106   : > { %v1667_v35 = vpop.eup %1666  ;;  %v606_v37 = vmin.f32 %v2067_v30, 0.0  ;;  %v2075_v38 = vadd.f32 %v1541_v34, %v2035_v59  ;;  %v472_v39 = vpop.f32.mrb[11].mxu0  ;;  %v1387_v40 = vadd.f32 -1.0, %v1665_v32  ;;  %vm574_vm9 = vcmp.gt.f32.partialorder %v2067_v30, 0.0 }
 0x107   : > { %v1669_v41 = vpop.eup %1668  ;;  %v1390_v42 = vadd.f32 -1.0, %v1667_v35  ;;  %v604_v43 = vmin.f32 %v2071_v33, 0.0  ;;  %v2079_v44 = vadd.f32 %v2035_v59, %v472_v39  ;;  %v726_v53 = vsel %vm566_vm1, %v2038_v61, %v1389_v36 }
 0x108   : > { %v648_v45 = vmul.f32 1.442695, %v606_v37  ;;  %v607_v46 = vmin.f32 %v2075_v38, 0.0  ;;  %v1388_v47 = vadd.f32 -1.0, %v1669_v41  ;;  %v724_v50 = vsel %vm564_vm2, %v2041_v63, %v1387_v40 }
 0x109   : > { %v644_v48 = vmul.f32 1.442695, %v604_v43  ;;  %v605_v49 = vmin.f32 %v2079_v44, 0.0  ;;  %v727_v57 = vsel %vm567_vm3, %v2045_v2, %v1390_v42  ;;  %vm572_vm10 = vcmp.gt.f32.partialorder %v2071_v33, 0.0 }
 0x10a   : > { %1678 = vpow2.f32 %v648_v45  ;;  %v650_v51 = vmul.f32 1.442695, %v607_v46  ;;  %v725_v52 = vsel %vm565_vm4, %v441_v5, %v1388_v47  ;;  %v774_v63 = vpack.c.bf16 %v727_v57, %v726_v53 }
 0x10b   : > { %1680 = vpow2.f32 %v644_v48  ;;  %v646_v54 = vmul.f32 1.442695, %v605_v49  ;;  %v1544_v55 = vpop.f32.mrb[12].mxu0  ;;  %v773_v56 = vpack.c.bf16 %v725_v52, %v724_v50  ;;  %vm575_vm11 = vcmp.gt.f32.partialorder %v2075_v38, 0.0 }
 0x10c   : > { %v1671_v58 = vpop.eup %1670  ;;  %1682 = vpow2.f32 %v650_v51  ;;  %v2093_v60 = vadd.f32 %v1544_v55, %v2035_v59  ;;  %v485_v62 = vpop.f32.mrb[13].mxu0  ;;  %vm573_vm12 = vcmp.gt.f32.partialorder %v2079_v44, 0.0 }
 0x10d   : > { %v1673_v0 = vpop.eup %1672  ;;  %1684 = vpow2.f32 %v646_v54  ;;  %v2097_v61 = vadd.f32 %v2035_v59, %v485_v62  ;;  %v1545_v1 = vpop.f32.mrb[14].mxu0  ;;  %1578 = vmatprep.mubr.bf16.mxu1 %v773_v56  ;;  %v1393_v4 = vadd.f32 -1.0, %v1671_v58 }
 0x10e   : > { %v1675_v3 = vpop.eup %1674  ;;  %v1391_v5 = vadd.f32 -1.0, %v1673_v0  ;;  %v610_v2 = vmin.f32 %v2093_v60, 0.0  ;;  %v2101_v6 = vadd.f32 %v1545_v1, %v2035_v59  ;;  %v488_v7 = vpop.f32.mrb[15].mxu0  ;;  %1579 = vmatmul.mubr.bf16.vlgmr.msra.gmra.mrb[0].mxu1 %v774_v63  ;;  %vm578_vm13 = vcmp.gt.f32.partialorder %v2093_v60, 0.0 }
 0x10f   : > { %v1677_v8 = vpop.eup %1676  ;;  %v1394_v9 = vadd.f32 -1.0, %v1675_v3  ;;  %v608_v10 = vmin.f32 %v2097_v61, 0.0  ;;  %v2106_v11 = vadd.f32 %v2035_v59, %v488_v7  ;;  %v730_v24 = vsel %vm570_vm5, %v2051_v13, %v1393_v4 }
 0x110   : > { %v1392_v12 = vadd.f32 -1.0, %v1677_v8  ;;  %v656_v14 = vmul.f32 1.442695, %v610_v2  ;;  %v611_v16 = vmin.f32 %v2101_v6, 0.0  ;;  %v728_v20 = vsel %vm568_vm6, %v2054_v15, %v1391_v5 }
 0x111   : > { %v652_v17 = vmul.f32 1.442695, %v608_v10  ;;  %v609_v19 = vmin.f32 %v2106_v11, 0.0  ;;  %v731_v28 = vsel %vm571_vm7, %v2058_v18, %v1394_v9  ;;  %vm576_vm14 = vcmp.gt.f32.partialorder %v2097_v61, 0.0 }
 0x112   : > { %1686 = vpow2.f32 %v656_v14  ;;  %v658_v22 = vmul.f32 1.442695, %v611_v16  ;;  %v729_v23 = vsel %vm569_vm8, %v2062_v21, %v1392_v12  ;;  %v776_v32 = vpack.c.bf16 %v731_v28, %v730_v24 }
 0x113   : > { %1688 = vpow2.f32 %v652_v17  ;;  %v654_v25 = vmul.f32 1.442695, %v609_v19  ;;  %v1548_v26 = vpop.f32.mrb[16].mxu0  ;;  %v775_v27 = vpack.c.bf16 %v729_v23, %v728_v20  ;;  %vm579_vm15 = vcmp.gt.f32.partialorder %v2101_v6, 0.0 }
 0x114   : > { %v1679_v29 = vpop.eup %1678  ;;  %1690 = vpow2.f32 %v658_v22  ;;  %v2121_v15 = vadd.f32 %v1548_v26, %v2035_v59  ;;  %v501_v31 = vpop.f32.mrb[17].mxu0  ;;  %vm577_vm0 = vcmp.gt.f32.partialorder %v2106_v11, 0.0 }
 0x115   : > { %v1681_v21 = vpop.eup %1680  ;;  %1692 = vpow2.f32 %v654_v25  ;;  %v2125_v13 = vadd.f32 %v2035_v59, %v501_v31  ;;  %v1549_v34 = vpop.f32.mrb[18].mxu0  ;;  %1582 = vmatprep.mubr.bf16.mxu1 %v775_v27  ;;  %v1397_v36 = vadd.f32 -1.0, %v1679_v29 }
 0x116   : > { %v1683_v35 = vpop.eup %1682  ;;  %v1395_v37 = vadd.f32 -1.0, %v1681_v21  ;;  %v614_v18 = vmin.f32 %v2121_v15, 0.0  ;;  %v2129_v39 = vadd.f32 %v1549_v34, %v2035_v59  ;;  %v504_v40 = vpop.f32.mrb[19].mxu0  ;;  %1583 = vmatmul.mubr.bf16.gmra.mrb[4].mxu1 %v776_v32  ;;  %vm582_vm1 = vcmp.gt.f32.partialorder %v2121_v15, 0.0 }
 0x117   : > { %v1685_v41 = vpop.eup %1684  ;;  %v1398_v42 = vadd.f32 -1.0, %v1683_v35  ;;  %v612_v43 = vmin.f32 %v2125_v13, 0.0  ;;  %v2134_v45 = vadd.f32 %v2035_v59, %v504_v40  ;;  %v734_v54 = vsel %vm574_vm9, %v2067_v30, %v1397_v36 }
 0x118   : > { %v1396_v46 = vadd.f32 -1.0, %v1685_v41  ;;  %v664_v47 = vmul.f32 1.442695, %v614_v18  ;;  %v615_v48 = vmin.f32 %v2129_v39, 0.0  ;;  %v732_v51 = vsel %vm572_vm10, %v2071_v33, %v1395_v37 }
 0x119   : > { %v660_v49 = vmul.f32 1.442695, %v612_v43  ;;  %v613_v50 = vmin.f32 %v2134_v45, 0.0  ;;  %v735_v58 = vsel %vm575_vm11, %v2075_v38, %v1398_v42  ;;  %vm580_vm2 = vcmp.gt.f32.partialorder %v2125_v13, 0.0 }
 0x11a   : > { %1694 = vpow2.f32 %v664_v47  ;;  %v666_v52 = vmul.f32 1.442695, %v615_v48  ;;  %v733_v53 = vsel %vm573_vm12, %v2079_v44, %v1396_v46  ;;  %v778_v0 = vpack.c.bf16 %v735_v58, %v734_v54 }
 0x11b   : > { %1696 = vpow2.f32 %v660_v49  ;;  %v662_v55 = vmul.f32 1.442695, %v613_v50  ;;  %v1552_v56 = vpop.f32.mrb[20].mxu0  ;;  %v777_v57 = vpack.c.bf16 %v733_v53, %v732_v51  ;;  %vm583_vm3 = vcmp.gt.f32.partialorder %v2129_v39, 0.0 }
 0x11c   : > { %v1687_v62 = vpop.eup %1686  ;;  %1698 = vpow2.f32 %v666_v52  ;;  %v2149_v33 = vadd.f32 %v1552_v56, %v2035_v59  ;;  %v517_v63 = vpop.f32.mrb[21].mxu0  ;;  %vm581_vm4 = vcmp.gt.f32.partialorder %v2134_v45, 0.0 }
 0x11d   : > { %v1689_v44 = vpop.eup %1688  ;;  %1700 = vpow2.f32 %v662_v55  ;;  %v2153_v30 = vadd.f32 %v2035_v59, %v517_v63  ;;  %v1553_v1 = vpop.f32.mrb[22].mxu0  ;;  %1586 = vmatprep.mubr.bf16.mxu1 %v777_v57  ;;  %v1401_v4 = vadd.f32 -1.0, %v1687_v62 }
 0x11e   : > { %v1691_v3 = vpop.eup %1690  ;;  %v1399_v5 = vadd.f32 -1.0, %v1689_v44  ;;  %v618_v38 = vmin.f32 %v2149_v33, 0.0  ;;  %v2157_v2 = vadd.f32 %v1553_v1, %v2035_v59  ;;  %v520_v7 = vpop.f32.mrb[23].mxu0  ;;  %1587 = vmatmul.mubr.bf16.gmra.mrb[8].mxu1 %v778_v0  ;;  %vm586_vm5 = vcmp.gt.f32.partialorder %v2149_v33, 0.0 }
 0x11f   : > { %v1693_v8 = vpop.eup %1692  ;;  %v1402_v9 = vadd.f32 -1.0, %v1691_v3  ;;  %v616_v10 = vmin.f32 %v2153_v30, 0.0  ;;  %v2162_v12 = vadd.f32 %v2035_v59, %v520_v7  ;;  %v738_v25 = vsel %vm578_vm13, %v2093_v60, %v1401_v4 }
 0x120   : > { %v1400_v14 = vadd.f32 -1.0, %v1693_v8  ;;  %v672_v16 = vmul.f32 1.442695, %v618_v38  ;;  %v619_v17 = vmin.f32 %v2157_v2, 0.0  ;;  %v736_v22 = vsel %vm576_vm14, %v2097_v61, %v1399_v5 }
 0x121   : > { %v668_v19 = vmul.f32 1.442695, %v616_v10  ;;  %v617_v20 = vmin.f32 %v2162_v12, 0.0  ;;  %v739_v29 = vsel %vm579_vm15, %v2101_v6, %v1402_v9  ;;  %vm584_vm6 = vcmp.gt.f32.partialorder %v2153_v30, 0.0 }
 0x122   : > { %1702 = vpow2.f32 %v672_v16  ;;  %v674_v23 = vmul.f32 1.442695, %v619_v17  ;;  %v737_v24 = vsel %vm577_vm0, %v2106_v11, %v1400_v14  ;;  %v780_v21 = vpack.c.bf16 %v739_v29, %v738_v25 }
 0x123   : > { %1704 = vpow2.f32 %v668_v19  ;;  %v670_v26 = vmul.f32 1.442695, %v617_v20  ;;  %v1556_v27 = vpop.f32.mrb[24].mxu0  ;;  %v779_v28 = vpack.c.bf16 %v737_v24, %v736_v22  ;;  %vm587_vm7 = vcmp.gt.f32.partialorder %v2157_v2, 0.0 }
 0x124   : > { %v1695_v31 = vpop.eup %1694  ;;  %1706 = vpow2.f32 %v674_v23  ;;  %v2177_v61 = vadd.f32 %v1556_v27, %v2035_v59  ;;  %v533_v32 = vpop.f32.mrb[25].mxu0  ;;  %vm585_vm8 = vcmp.gt.f32.partialorder %v2162_v12, 0.0 }
 0x125   : > { %v1697_v11 = vpop.eup %1696  ;;  %1708 = vpow2.f32 %v670_v26  ;;  %v2181_v60 = vadd.f32 %v2035_v59, %v533_v32  ;;  %v1557_v34 = vpop.f32.mrb[26].mxu0  ;;  %1590 = vmatprep.mubr.bf16.mxu1 %v779_v28  ;;  %v1405_v36 = vadd.f32 -1.0, %v1695_v31 }
 0x126   : > { %v1699_v35 = vpop.eup %1698  ;;  %v1403_v37 = vadd.f32 -1.0, %v1697_v11  ;;  %v622_v6 = vmin.f32 %v2177_v61, 0.0  ;;  %v2185_v18 = vadd.f32 %v1557_v34, %v2035_v59  ;;  %v536_v40 = vpop.f32.mrb[27].mxu0  ;;  %1591 = vmatmul.mubr.bf16.gmra.mrb[12].mxu1 %v780_v21  ;;  %vm590_vm9 = vcmp.gt.f32.partialorder %v2177_v61, 0.0 }
 0x127   : > { %v1701_v41 = vpop.eup %1700  ;;  %v1406_v42 = vadd.f32 -1.0, %v1699_v35  ;;  %v620_v43 = vmin.f32 %v2181_v60, 0.0  ;;  %v2190_v46 = vadd.f32 %v2035_v59, %v536_v40  ;;  %v742_v55 = vsel %vm582_vm1, %v2121_v15, %v1405_v36 }
 0x128   : > { %v1404_v47 = vadd.f32 -1.0, %v1701_v41  ;;  %v680_v48 = vmul.f32 1.442695, %v622_v6  ;;  %v623_v49 = vmin.f32 %v2185_v18, 0.0  ;;  %v740_v52 = vsel %vm580_vm2, %v2125_v13, %v1403_v37 }
 0x129   : > { %v676_v50 = vmul.f32 1.442695, %v620_v43  ;;  %v621_v51 = vmin.f32 %v2190_v46, 0.0  ;;  %v743_v62 = vsel %vm583_vm3, %v2129_v39, %v1406_v42  ;;  %vm588_vm10 = vcmp.gt.f32.partialorder %v2181_v60, 0.0 }
 0x12a   : > { %1710 = vpow2.f32 %v680_v48  ;;  %v682_v53 = vmul.f32 1.442695, %v623_v49  ;;  %v741_v54 = vsel %vm581_vm4, %v2134_v45, %v1404_v47  ;;  %v782_v44 = vpack.c.bf16 %v743_v62, %v742_v55  ;;  %v2250_v55 = vld [vmem:[%s2570_s4] ss:$0 sm:$0xff] }
 0x12b   : > { %1712 = vpow2.f32 %v676_v50  ;;  %v678_v56 = vmul.f32 1.442695, %v621_v51  ;;  %v1560_v57 = vpop.f32.mrb[28].mxu0  ;;  %v781_v58 = vpack.c.bf16 %v741_v54, %v740_v52  ;;  %vm591_vm11 = vcmp.gt.f32.partialorder %v2185_v18, 0.0  ;;  %v2244_v54 = vld [vmem:[%s2571_s5] sm:$0x1] }
 0x12c   : > { %v1703_v63 = vpop.eup %1702  ;;  %1714 = vpow2.f32 %v682_v53  ;;  %v2205_v13 = vadd.f32 %v1560_v57, %v2035_v59  ;;  %v549_v0 = vpop.f32.mrb[29].mxu0  ;;  %vm589_vm12 = vcmp.gt.f32.partialorder %v2190_v46, 0.0  ;;  %1524 = vmatprep.mubr.bf16.mxu0 %v2244_v54  ;;  %v1197_v57 = vld [vmem:[#allocation2] sm:$0x1] }
 0x12d   : > { %v1705_v45 = vpop.eup %1704  ;;  %1716 = vpow2.f32 %v678_v56  ;;  %v2209_v15 = vadd.f32 %v2035_v59, %v549_v0  ;;  %v1561_v1 = vpop.f32.mrb[30].mxu0  ;;  %1594 = vmatprep.mubr.bf16.mxu1 %v781_v58  ;;  %v1409_v4 = vadd.f32 -1.0, %v1703_v63  ;;  %v1854_v63 = vmov 0  }
 0x12e   : > { %v1707_v3 = vpop.eup %1706  ;;  %v1407_v5 = vadd.f32 -1.0, %v1705_v45  ;;  %v626_v39 = vmin.f32 %v2205_v13, 0.0  ;;  %v2213_v38 = vadd.f32 %v1561_v1, %v2035_v59  ;;  %v552_v7 = vpop.f32.mrb[31].mxu0  ;;  %1595 = vmatmul.mubr.bf16.gmra.mrb[16].mxu1 %v782_v44  ;;  %vm594_vm13 = vcmp.gt.f32.partialorder %v2205_v13, 0.0  ;;  %1651 = vset.pattern.permute.xlu0 %v1854_v63 }
 0x12f   : > { %v1709_v8 = vpop.eup %1708  ;;  %v1410_v9 = vadd.f32 -1.0, %v1707_v3  ;;  %v624_v10 = vmin.f32 %v2209_v15, 0.0  ;;  %v553_v14 = vadd.f32 %v2035_v59, %v552_v7  ;;  %v746_v59 = vsel %vm586_vm5, %v2149_v33, %v1409_v4  ;;  %1216 = vperm.xlu0 %1651, %v1197_v57  }
 0x130   : > { %v1408_v16 = vadd.f32 -1.0, %v1709_v8  ;;  %v688_v17 = vmul.f32 1.442695, %v626_v39  ;;  %v627_v19 = vmin.f32 %v2213_v38, 0.0  ;;  %v744_v23 = vsel %vm584_vm6, %v2153_v30, %v1407_v5 }
 0x131   : > { %v684_v20 = vmul.f32 1.442695, %v624_v10  ;;  %v625_v22 = vmin.f32 %v553_v14, 0.0  ;;  %v747_v28 = vsel %vm587_vm7, %v2157_v2, %v1410_v9  ;;  %vm592_vm14 = vcmp.gt.f32.partialorder %v2209_v15, 0.0 }
 0x132   : > { %1718 = vpow2.f32 %v688_v17  ;;  %v690_v24 = vmul.f32 1.442695, %v627_v19  ;;  %v745_v25 = vsel %vm585_vm8, %v2162_v12, %v1408_v16  ;;  %v784_v31 = vpack.c.bf16 %v747_v28, %v746_v59 }
 0x133   : > { %1720 = vpow2.f32 %v684_v20  ;;  %v686_v26 = vmul.f32 1.442695, %v625_v22  ;;  %v783_v27 = vpack.c.bf16 %v745_v25, %v744_v23  ;;  %vm595_vm15 = vcmp.gt.f32.partialorder %v2213_v38, 0.0 }
 0x134   : > { %v1711_v29 = vpop.eup %1710  ;;  %1722 = vpow2.f32 %v690_v24  ;;  %vm593_vm0 = vcmp.gt.f32.partialorder %v553_v14, 0.0 }
 0x135   : > { %v1713_v32 = vpop.eup %1712  ;;  %v1413_v21 = vadd.f32 -1.0, %v1711_v29  ;;  %1724 = vpow2.f32 %v686_v26  ;;  %1598 = vmatprep.mubr.bf16.mxu1 %v783_v27 }
 0x136   : > { %v1715_v30 = vpop.eup %1714  ;;  %v1411_v12 = vadd.f32 -1.0, %v1713_v32  ;;  %1599 = vmatmul.mubr.bf16.gmra.mrb[20].mxu1 %v784_v31 }
 0x137   : > { %v1717_v11 = vpop.eup %1716  ;;  %v1414_v33 = vadd.f32 -1.0, %v1715_v30  ;;  %v750_v2 = vsel %vm590_vm9, %v2177_v61, %v1413_v21 }
 0x138   : > { %v1412_v34 = vadd.f32 -1.0, %v1717_v11  ;;  %v748_v36 = vsel %vm588_vm10, %v2181_v60, %v1411_v12 }
 0x139   : > { %v751_v35 = vsel %vm591_vm11, %v2185_v18, %v1414_v33 }
 0x13a   : > { %v749_v37 = vsel %vm589_vm12, %v2190_v46, %v1412_v34  ;;  %v786_v6 = vpack.c.bf16 %v751_v35, %v750_v2 }
 0x13b   : > { %v785_v40 = vpack.c.bf16 %v749_v37, %v748_v36 }
 0x13c   : > { %v1719_v41 = vpop.eup %1718 }
 0x13d   : > { %v1721_v42 = vpop.eup %1720  ;;  %v1417_v43 = vadd.f32 -1.0, %v1719_v41  ;;  %1602 = vmatprep.mubr.bf16.mxu1 %v785_v40 }
 0x13e   : > { %v1723_v47 = vpop.eup %1722  ;;  %v1415_v48 = vadd.f32 -1.0, %v1721_v42  ;;  %1603 = vmatmul.mubr.bf16.gmra.mrb[24].mxu1 %v786_v6 }
 0x13f   : > { %v1725_v61 = vpop.eup %1724  ;;  %v1418_v18 = vadd.f32 -1.0, %v1723_v47  ;;  %v754_v60 = vsel %vm594_vm13, %v2205_v13, %v1417_v43 }
 0x140   : > { %v1416_v46 = vadd.f32 -1.0, %v1725_v61  ;;  %v752_v49 = vsel %vm592_vm14, %v2209_v15, %v1415_v48 }
 0x141   : > { %v755_v50 = vsel %vm595_vm15, %v2213_v38, %v1418_v18 }
 0x142   : > { %v753_v51 = vsel %vm593_vm0, %v553_v14, %v1416_v46  ;;  %v788_v52 = vpack.c.bf16 %v755_v50, %v754_v60 }
 0x143   : > { %v787_v53 = vpack.c.bf16 %v753_v51, %v752_v49 }
 0x145   : > { %1606 = vmatprep.mubr.bf16.mxu1 %v787_v53 }
 0x146   : > { %1607 = vmatmul.mubr.bf16.gmra.mrb[28].mxu1 %v788_v52 }
 0x1e1   : > { %v1580_v56 = vpop.f32.mrb[0].mxu1 }
 0x1e2   : > { %v886_v58 = vadd.f32 %v1580_v56, %v2250_v55  ;;  %v877_v62 = vpop.f32.mrb[1].mxu1 }
 0x1e3   : > { %v2254_v13 = vadd.f32 %v2250_v55, %v877_v62  ;;  %v1581_v0 = vpop.f32.mrb[2].mxu1 }
 0x1e4   : > { %v1038_v44 = vmin.f32 %v886_v58, 0.0  ;;  %v889_v45 = vadd.f32 %v1581_v0, %v2250_v55  ;;  %v880_v15 = vpop.f32.mrb[3].mxu1  ;;  %vm1006_vm1 = vcmp.gt.f32.partialorder %v886_v58, 0.0 }
 0x1e5   : > { %v1036_v1 = vmin.f32 %v2254_v13, 0.0  ;;  %v881_v3 = vadd.f32 %v2250_v55, %v880_v15  ;;  %vm1004_vm2 = vcmp.gt.f32.partialorder %v2254_v13, 0.0 }
 0x1e6   : > { %v1072_v4 = vmul.f32 1.442695, %v1038_v44  ;;  %v1039_v5 = vmin.f32 %v889_v45, 0.0  ;;  %vm1007_vm3 = vcmp.gt.f32.partialorder %v889_v45, 0.0 }
 0x1e7   : > { %v1068_v39 = vmul.f32 1.442695, %v1036_v1  ;;  %v1037_v38 = vmin.f32 %v881_v3, 0.0  ;;  %vm1005_vm4 = vcmp.gt.f32.partialorder %v881_v3, 0.0 }
 0x1e8   : > { %1726 = vpow2.f32 %v1072_v4  ;;  %v1074_v7 = vmul.f32 1.442695, %v1039_v5 }
 0x1e9   : > { %1728 = vpow2.f32 %v1068_v39  ;;  %v1070_v8 = vmul.f32 1.442695, %v1037_v38  ;;  %v1584_v9 = vpop.f32.mrb[4].mxu1 }
 0x1ea   : > { %1730 = vpow2.f32 %v1074_v7  ;;  %v2260_v10 = vadd.f32 %v1584_v9, %v2250_v55  ;;  %v893_v14 = vpop.f32.mrb[5].mxu1 }
 0x1eb   : > { %1732 = vpow2.f32 %v1070_v8  ;;  %v2263_v16 = vadd.f32 %v2250_v55, %v893_v14  ;;  %v1585_v17 = vpop.f32.mrb[6].mxu1 }
 0x1ec   : > { %v1042_v19 = vmin.f32 %v2260_v10, 0.0  ;;  %v2267_v20 = vadd.f32 %v1585_v17, %v2250_v55  ;;  %v896_v22 = vpop.f32.mrb[7].mxu1  ;;  %vm1010_vm5 = vcmp.gt.f32.partialorder %v2260_v10, 0.0 }
 0x1ed   : > { %v1040_v23 = vmin.f32 %v2263_v16, 0.0  ;;  %v2271_v24 = vadd.f32 %v2250_v55, %v896_v22  ;;  %vm1008_vm6 = vcmp.gt.f32.partialorder %v2263_v16, 0.0 }
 0x1ee   : > { %v1080_v25 = vmul.f32 1.442695, %v1042_v19  ;;  %v1043_v59 = vmin.f32 %v2267_v20, 0.0  ;;  %vm1011_vm7 = vcmp.gt.f32.partialorder %v2267_v20, 0.0 }
 0x1ef   : > { %v1076_v26 = vmul.f32 1.442695, %v1040_v23  ;;  %v1041_v27 = vmin.f32 %v2271_v24, 0.0  ;;  %vm1009_vm8 = vcmp.gt.f32.partialorder %v2271_v24, 0.0 }
 0x1f0   : > { %1734 = vpow2.f32 %v1080_v25  ;;  %v1082_v28 = vmul.f32 1.442695, %v1043_v59 }
 0x1f1   : > { %1736 = vpow2.f32 %v1076_v26  ;;  %v1078_v29 = vmul.f32 1.442695, %v1041_v27  ;;  %v1588_v31 = vpop.f32.mrb[8].mxu1 }
 0x1f2   : > { %v1727_v32 = vpop.eup %1726  ;;  %1738 = vpow2.f32 %v1082_v28  ;;  %v2276_v21 = vadd.f32 %v1588_v31, %v2250_v55  ;;  %v909_v30 = vpop.f32.mrb[9].mxu1 }
 0x1f3   : > { %v1729_v12 = vpop.eup %1728  ;;  %v1430_v11 = vadd.f32 -1.0, %v1727_v32  ;;  %1740 = vpow2.f32 %v1078_v29  ;;  %v2279_v33 = vadd.f32 %v2250_v55, %v909_v30  ;;  %v1589_v34 = vpop.f32.mrb[10].mxu1 }
 0x1f4   : > { %v1731_v2 = vpop.eup %1730  ;;  %v1428_v35 = vadd.f32 -1.0, %v1729_v12  ;;  %v1046_v36 = vmin.f32 %v2276_v21, 0.0  ;;  %v2283_v37 = vadd.f32 %v1589_v34, %v2250_v55  ;;  %v912_v6 = vpop.f32.mrb[11].mxu1  ;;  %vm1014_vm9 = vcmp.gt.f32.partialorder %v2276_v21, 0.0 }
 0x1f5   : > { %v1733_v40 = vpop.eup %1732  ;;  %v1431_v41 = vadd.f32 -1.0, %v1731_v2  ;;  %v1044_v42 = vmin.f32 %v2279_v33, 0.0  ;;  %v2287_v43 = vsel %vm1006_vm1, %v886_v58, %v1430_v11  ;;  %v2293_v46 = vadd.f32 %v2250_v55, %v912_v6 }
 0x1f6   : > { %v1429_v47 = vadd.f32 -1.0, %v1733_v40  ;;  %v1088_v48 = vmul.f32 1.442695, %v1046_v36  ;;  %v1047_v60 = vmin.f32 %v2283_v37, 0.0  ;;  %v2296_v49 = vsel %vm1004_vm2, %v2254_v13, %v1428_v35 }
 0x1f7   : > { %v2289_v61 = vsel %vm1007_vm3, %v889_v45, %v1431_v41  ;;  %v1084_v18 = vmul.f32 1.442695, %v1044_v42  ;;  %v1045_v58 = vmin.f32 %v2293_v46, 0.0  ;;  %vm1015_vm10 = vcmp.gt.f32.partialorder %v2283_v37, 0.0 }
 0x1f8   : > { %v1199_v50 = vpack.c.bf16 %v2289_v61, %v2287_v43  ;;  %v2300_v51 = vsel %vm1005_vm4, %v881_v3, %v1429_v47  ;;  %1742 = vpow2.f32 %v1088_v48  ;;  %v1090_v53 = vmul.f32 1.442695, %v1047_v60 }
 0x1f9   : > { %v1198_v52 = vpack.c.bf16 %v2300_v51, %v2296_v49  ;;  %1744 = vpow2.f32 %v1084_v18  ;;  %v1592_v56 = vpop.f32.mrb[12].mxu1  ;;  %v1086_v3 = vmul.f32 1.442695, %v1045_v58  ;;  %vm1012_vm11 = vcmp.gt.f32.partialorder %v2279_v33, 0.0 }
 0x1fa   : > { %v1735_v57 = vpop.eup %1734  ;;  %v2306_v62 = vadd.f32 %v1592_v56, %v2250_v55  ;;  %v925_v63 = vpop.f32.mrb[13].mxu1  ;;  %1746 = vpow2.f32 %v1090_v53  ;;  %vm1013_vm12 = vcmp.gt.f32.partialorder %v2293_v46, 0.0 }
 0x1fb   : > { %v1737_v13 = vpop.eup %1736  ;;  %v1434_v0 = vadd.f32 -1.0, %v1735_v57  ;;  %v2310_v44 = vadd.f32 %v2250_v55, %v925_v63  ;;  %v1593_v45 = vpop.f32.mrb[14].mxu1  ;;  %1748 = vpow2.f32 %v1086_v3 }
 0x1fc   : > { %v1739_v15 = vpop.eup %1738  ;;  %v1432_v1 = vadd.f32 -1.0, %v1737_v13  ;;  %v1050_v4 = vmin.f32 %v2306_v62, 0.0  ;;  %v928_v5 = vpop.f32.mrb[15].mxu1  ;;  %v2326_v22 = vadd.f32 %v1593_v45, %v2250_v55  ;;  %vm1018_vm13 = vcmp.gt.f32.partialorder %v2306_v62, 0.0 }
 0x1fd   : > { %v1741_v39 = vpop.eup %1740  ;;  %v1435_v38 = vadd.f32 -1.0, %v1739_v15  ;;  %v1048_v7 = vmin.f32 %v2310_v44, 0.0  ;;  %v2320_v8 = vsel %vm1010_vm5, %v2260_v10, %v1434_v0  ;;  %v2329_v23 = vadd.f32 %v2250_v55, %v928_v5 }
 0x1fe   : > { %v1433_v9 = vadd.f32 -1.0, %v1741_v39  ;;  %v1096_v14 = vmul.f32 1.442695, %v1050_v4  ;;  %v2334_v25 = vsel %vm1008_vm6, %v2263_v16, %v1432_v1  ;;  %v1051_v26 = vmin.f32 %v2326_v22, 0.0 }
 0x1ff   : > { %v2323_v17 = vsel %vm1011_vm7, %v2267_v20, %v1435_v38  ;;  %v1092_v19 = vmul.f32 1.442695, %v1048_v7  ;;  %v1049_v29 = vmin.f32 %v2329_v23, 0.0  ;;  %vm1016_vm14 = vcmp.gt.f32.partialorder %v2310_v44, 0.0 }
 0x200   : > { %v1201_v10 = vpack.c.bf16 %v2323_v17, %v2320_v8  ;;  %v2339_v59 = vsel %vm1009_vm8, %v2271_v24, %v1433_v9  ;;  %1750 = vpow2.f32 %v1096_v14  ;;  %v1098_v30 = vmul.f32 1.442695, %v1051_v26 }
 0x201   : > { %v1200_v20 = vpack.c.bf16 %v2339_v59, %v2334_v25  ;;  %v1596_v27 = vpop.f32.mrb[16].mxu1  ;;  %1752 = vpow2.f32 %v1092_v19  ;;  %v1094_v34 = vmul.f32 1.442695, %v1049_v29  ;;  %vm1019_vm15 = vcmp.gt.f32.partialorder %v2326_v22, 0.0 }
 0x202   : > { %v1743_v28 = vpop.eup %1742  ;;  %v2346_v16 = vadd.f32 %v1596_v27, %v2250_v55  ;;  %v941_v31 = vpop.f32.mrb[17].mxu1  ;;  %1754 = vpow2.f32 %v1098_v30  ;;  %vm1017_vm0 = vcmp.gt.f32.partialorder %v2329_v23, 0.0  ;;  %v1219_v8 = vlaneseq }
 0x203   : > { %v1745_v32 = vpop.eup %1744  ;;  %v2349_v24 = vadd.f32 %v2250_v55, %v941_v31  ;;  %v1597_v12 = vpop.f32.mrb[18].mxu1  ;;  %v1438_v11 = vadd.f32 -1.0, %v1743_v28  ;;  %1756 = vpow2.f32 %v1094_v34  ;;  %v1855_v59 = vmov 1966171168  }
 0x204   : > { %v1054_v2 = vmin.f32 %v2346_v16, 0.0  ;;  %v944_v35 = vpop.f32.mrb[19].mxu1  ;;  %v1747_v36 = vpop.eup %1746  ;;  %v1436_v40 = vadd.f32 -1.0, %v1745_v32  ;;  %v2356_v48 = vadd.f32 %v1597_v12, %v2250_v55  ;;  %vm1022_vm1 = vcmp.gt.f32.partialorder %v2346_v16, 0.0 }
 0x205   : > { %v1052_v6 = vmin.f32 %v2349_v24, 0.0  ;;  %v1439_v41 = vadd.f32 -1.0, %v1747_v36  ;;  %v2359_v18 = vadd.f32 %v2250_v55, %v944_v35  ;;  %v1749_v60 = vpop.eup %1748  ;;  %v2362_v53 = vsel %vm1014_vm9, %v2276_v21, %v1438_v11 }
 0x206   : > { %v1104_v42 = vmul.f32 1.442695, %v1054_v2  ;;  %v1437_v58 = vadd.f32 -1.0, %v1749_v60  ;;  %v1055_v0 = vmin.f32 %v2356_v48, 0.0  ;;  %v2377_v15 = vsel %vm1012_vm11, %v2279_v33, %v1436_v40 }
 0x207   : > { %v1100_v47 = vmul.f32 1.442695, %v1052_v6  ;;  %v2365_v56 = vsel %vm1015_vm10, %v2283_v37, %v1439_v41  ;;  %v1053_v45 = vmin.f32 %v2359_v18, 0.0  ;;  %vm1020_vm2 = vcmp.gt.f32.partialorder %v2349_v24, 0.0 }
 0x208   : > { %v1203_v57 = vpack.c.bf16 %v2365_v56, %v2362_v53  ;;  %v2380_v1 = vsel %vm1013_vm12, %v2293_v46, %v1437_v58  ;;  %v1106_v38 = vmul.f32 1.442695, %v1055_v0  ;;  %vm1023_vm3 = vcmp.gt.f32.partialorder %v2356_v48, 0.0 }
 0x209   : > { %v1600_v63 = vpop.f32.mrb[20].mxu1  ;;  %1758 = vpow2.f32 %v1100_v47  ;;  %v1202_v39 = vpack.c.bf16 %v2380_v1, %v2377_v15  ;;  %v1102_v7 = vmul.f32 1.442695, %v1053_v45  ;;  %vm1021_vm4 = vcmp.gt.f32.partialorder %v2359_v18, 0.0 }
 0x20a   : > { %v1751_v13 = vpop.eup %1750  ;;  %v2374_v21 = vadd.f32 %v1600_v63, %v2250_v55  ;;  %v957_v37 = vpop.f32.mrb[21].mxu1  ;;  %1760 = vpow2.f32 %v1104_v42  ;;  %v1220_v17 = vshrl.u32 %v1219_v8, 7 }
 0x20b   : > { %v2383_v3 = vadd.f32 %v2250_v55, %v957_v37  ;;  %v1601_v4 = vpop.f32.mrb[22].mxu1  ;;  %v1753_v5 = vpop.eup %1752  ;;  %v1442_v14 = vadd.f32 -1.0, %v1751_v13  ;;  %1762 = vpow2.f32 %v1106_v38 }
 0x20c   : > { %v960_v9 = vpop.f32.mrb[23].mxu1  ;;  %v1058_v33 = vmin.f32 %v2374_v21, 0.0  ;;  %v2393_v19 = vadd.f32 %v1601_v4, %v2250_v55  ;;  %v1755_v26 = vpop.eup %1754  ;;  %v1440_v27 = vadd.f32 -1.0, %v1753_v5  ;;  %1764 = vpow2.f32 %v1102_v7 }
 0x20d   : > { %v1056_v46 = vmin.f32 %v2383_v3, 0.0  ;;  %v2396_v29 = vadd.f32 %v2250_v55, %v960_v9  ;;  %v1757_v31 = vpop.eup %1756  ;;  %v1443_v32 = vadd.f32 -1.0, %v1755_v26  ;;  %v2403_v11 = vsel %vm1018_vm13, %v2306_v62, %v1442_v14 }
 0x20e   : > { %v1112_v28 = vmul.f32 1.442695, %v1058_v33  ;;  %v1059_v12 = vmin.f32 %v2393_v19, 0.0  ;;  %v1441_v34 = vadd.f32 -1.0, %v1757_v31  ;;  %v2417_v62 = vsel %vm1016_vm14, %v2310_v44, %v1440_v27 }
 0x20f   : > { %v1108_v30 = vmul.f32 1.442695, %v1056_v46  ;;  %v1057_v2 = vmin.f32 %v2396_v29, 0.0  ;;  %v2409_v36 = vsel %vm1019_vm15, %v2326_v22, %v1443_v32  ;;  %vm1026_vm5 = vcmp.gt.f32.partialorder %v2374_v21, 0.0 }
 0x210   : > { %1766 = vpow2.f32 %v1112_v28  ;;  %v1114_v6 = vmul.f32 1.442695, %v1059_v12  ;;  %v1205_v42 = vpack.c.bf16 %v2409_v36, %v2403_v11  ;;  %v2422_v47 = vsel %vm1017_vm0, %v2329_v23, %v1441_v34 }
 0x211   : > { %v1604_v35 = vpop.f32.mrb[24].mxu1  ;;  %1768 = vpow2.f32 %v1108_v30  ;;  %v1110_v60 = vmul.f32 1.442695, %v1057_v2  ;;  %v1204_v63 = vpack.c.bf16 %v2422_v47, %v2417_v62  ;;  %vm1024_vm6 = vcmp.gt.f32.partialorder %v2383_v3, 0.0 }
 0x212   : > { %v2412_v40 = vadd.f32 %v1604_v35, %v2250_v55  ;;  %v973_v41 = vpop.f32.mrb[25].mxu1  ;;  %1770 = vpow2.f32 %v1114_v6  ;;  %vm1027_vm7 = vcmp.gt.f32.partialorder %v2393_v19, 0.0  ;;  %vm1025_vm8 = vcmp.gt.f32.partialorder %v2396_v29, 0.0 }
 0x213   : > { %v1605_v22 = vpop.f32.mrb[26].mxu1  ;;  %v1759_v58 = vpop.eup %1758  ;;  %1772 = vpow2.f32 %v1110_v60  ;;  %v2428_v44 = vadd.f32 %v2250_v55, %v973_v41  ;;  %v1221_v25 = vsub.s32 0, %v1220_v17 }
 0x214   : > { %v976_v13 = vpop.f32.mrb[27].mxu1  ;;  %v1761_v0 = vpop.eup %1760  ;;  %v1062_v45 = vmin.f32 %v2412_v40, 0.0  ;;  %v2431_v37 = vadd.f32 %v1605_v22, %v2250_v55  ;;  %v1444_v4 = vadd.f32 -1.0, %v1759_v58  ;;  %vm1030_vm9 = vcmp.gt.f32.partialorder %v2412_v40, 0.0 }
 0x215   : > { %v2436_v23 = vadd.f32 %v2250_v55, %v976_v13  ;;  %v1060_v38 = vmin.f32 %v2428_v44, 0.0  ;;  %v1763_v7 = vpop.eup %1762  ;;  %v1446_v9 = vadd.f32 -1.0, %v1761_v0  ;;  %vm1028_vm11 = vcmp.gt.f32.partialorder %v2428_v44, 0.0 }
 0x216   : > { %v1120_v5 = vmul.f32 1.442695, %v1062_v45  ;;  %v1063_v14 = vmin.f32 %v2431_v37, 0.0  ;;  %v1765_v46 = vpop.eup %1764  ;;  %v1447_v26 = vadd.f32 -1.0, %v1763_v7  ;;  %v1180_v41 = vsel %vm1020_vm2, %v2349_v24, %v1444_v4 }
 0x217   : > { %v1061_v33 = vmin.f32 %v2436_v23, 0.0  ;;  %v1116_v27 = vmul.f32 1.442695, %v1060_v38  ;;  %v1445_v31 = vadd.f32 -1.0, %v1765_v46  ;;  %v1182_v13 = vsel %vm1022_vm1, %v2346_v16, %v1446_v9 }
 0x218   : > { %1774 = vpow2.f32 %v1120_v5  ;;  %v1122_v32 = vmul.f32 1.442695, %v1063_v14  ;;  %v1183_v0 = vsel %vm1023_vm3, %v2356_v48, %v1447_v26  ;;  %vm1031_vm10 = vcmp.gt.f32.partialorder %v2431_v37, 0.0 }
 0x219   : > { %v1608_v28 = vpop.f32.mrb[28].mxu1  ;;  %v1118_v30 = vmul.f32 1.442695, %v1061_v33  ;;  %1776 = vpow2.f32 %v1116_v27  ;;  %v1181_v14 = vsel %vm1021_vm4, %v2359_v18, %v1445_v31  ;;  %v1207_v26 = vpack.c.bf16 %v1183_v0, %v1182_v13 }
 0x21a   : > { %v2445_v12 = vadd.f32 %v1608_v28, %v2250_v55  ;;  %v989_v34 = vpop.f32.mrb[29].mxu1  ;;  %v1767_v2 = vpop.eup %1766  ;;  %1778 = vpow2.f32 %v1122_v32  ;;  %v1206_v48 = vpack.c.bf16 %v1181_v14, %v1180_v41  ;;  %vm1029_vm12 = vcmp.gt.f32.partialorder %v2436_v23, 0.0 }
 0x21b   : > { %v2449_v35 = vadd.f32 %v2250_v55, %v989_v34  ;;  %v1609_v6 = vpop.f32.mrb[30].mxu1  ;;  %v1769_v60 = vpop.eup %1768  ;;  %v1450_v45 = vadd.f32 -1.0, %v1767_v2  ;;  %1780 = vpow2.f32 %v1118_v30  ;;  %vm1284_vm1 = vcmp.lt.s32.totalorder %v1219_v8, 256 }
 0x21c   : > { %v1066_v22 = vmin.f32 %v2445_v12, 0.0  ;;  %v992_v58 = vpop.f32.mrb[31].mxu1  ;;  %v1448_v5 = vadd.f32 -1.0, %v1769_v60  ;;  %v1771_v7 = vpop.eup %1770  ;;  %v1001_v4 = vadd.f32 %v1609_v6, %v2250_v55  ;;  %1508 = vmatprep.subr.bf16.mxu0 %v1206_v48  ;;  %vm1034_vm13 = vcmp.gt.f32.partialorder %v2445_v12, 0.0 }
 0x21d   : > { %v1064_v38 = vmin.f32 %v2449_v35, 0.0  ;;  %v2467_v33 = vadd.f32 %v2250_v55, %v992_v58  ;;  %v1773_v16 = vpop.eup %1772  ;;  %v1451_v9 = vadd.f32 -1.0, %v1771_v7  ;;  %1509 = vmatpush3.bf16.xpose.msra.mxu0 %v1198_v52  ;;  %v1186_v30 = vsel %vm1026_vm5, %v2374_v21, %v1450_v45 }
 0x21e   : > { %v1128_v24 = vmul.f32 1.442695, %v1066_v22  ;;  %v1449_v27 = vadd.f32 -1.0, %v1773_v16  ;;  %v1067_v28 = vmin.f32 %v1001_v4, 0.0  ;;  %v1184_v55 = vsel %vm1024_vm6, %v2383_v3, %v1448_v5  ;;  %1510 = vmatprep.subr.bf16.mxu0 %v1207_v26 }
 0x21f   : > { %v1124_v46 = vmul.f32 1.442695, %v1064_v38  ;;  %v1065_v32 = vmin.f32 %v2467_v33, 0.0  ;;  %v1187_v34 = vsel %vm1027_vm7, %v2393_v19, %v1451_v9  ;;  %vm1035_vm14 = vcmp.gt.f32.partialorder %v1001_v4, 0.0 }
 0x220   : > { %1782 = vpow2.f32 %v1128_v24  ;;  %v1130_v18 = vmul.f32 1.442695, %v1067_v28  ;;  %v1185_v31 = vsel %vm1025_vm8, %v2396_v29, %v1449_v27  ;;  %v1209_v60 = vpack.c.bf16 %v1187_v34, %v1186_v30 }
 0x221   : > { %1784 = vpow2.f32 %v1124_v46  ;;  %v1126_v6 = vmul.f32 1.442695, %v1065_v32  ;;  %v1208_v41 = vpack.c.bf16 %v1185_v31, %v1184_v55  ;;  %vm1032_vm15 = vcmp.gt.f32.partialorder %v2449_v35, 0.0 }
 0x222   : > { %v1775_v2 = vpop.eup %1774  ;;  %1786 = vpow2.f32 %v1130_v18  ;;  %vm1033_vm0 = vcmp.gt.f32.partialorder %v2467_v33, 0.0 }
 0x223   : > { %v1777_v3 = vpop.eup %1776  ;;  %v1454_v22 = vadd.f32 -1.0, %v1775_v2  ;;  %1788 = vpow2.f32 %v1126_v6 }
 0x224   : > { %v1779_v58 = vpop.eup %1778  ;;  %v1452_v49 = vadd.f32 -1.0, %v1777_v3 }
 0x225   : > { %v1781_v51 = vpop.eup %1780  ;;  %v1455_v52 = vadd.f32 -1.0, %v1779_v58  ;;  %v1190_v19 = vsel %vm1030_vm9, %v2412_v40, %v1454_v22  ;;  %1511 = vmatpush3.bf16.xpose.msra.mxu0 %v1199_v50 }
 0x226   : > { %v1453_v21 = vadd.f32 -1.0, %v1781_v51  ;;  %v1188_v0 = vsel %vm1028_vm11, %v2428_v44, %v1452_v49  ;;  %1512 = vmatprep.subr.bf16.mxu0 %v1208_v41 }
 0x227   : > { %v1191_v29 = vsel %vm1031_vm10, %v2431_v37, %v1455_v52 }
 0x228   : > { %v1189_v45 = vsel %vm1029_vm12, %v2436_v23, %v1453_v21  ;;  %v1211_v5 = vpack.c.bf16 %v1191_v29, %v1190_v19 }
 0x229   : > { %v1210_v7 = vpack.c.bf16 %v1189_v45, %v1188_v0 }
 0x22a   : > { %v1783_v13 = vpop.eup %1782 }
 0x22b   : > { %v1785_v38 = vpop.eup %1784  ;;  %v1458_v24 = vadd.f32 -1.0, %v1783_v13 }
 0x22c   : > { %v1787_v14 = vpop.eup %1786  ;;  %v1456_v16 = vadd.f32 -1.0, %v1785_v38 }
 0x22d   : > { %v1789_v9 = vpop.eup %1788  ;;  %v1459_v40 = vadd.f32 -1.0, %v1787_v14  ;;  %v1194_v43 = vsel %vm1034_vm13, %v2445_v12, %v1458_v24  ;;  %1513 = vmatpush3.bf16.xpose.msra.mxu0 %v1200_v20  ;;  %v1268_v20 = vunpack.c.l.s4 %v1855_v59 }
 0x22e   : > { %v1457_v37 = vadd.f32 -1.0, %v1789_v9  ;;  %v1192_v50 = vsel %vm1032_vm15, %v2449_v35, %v1456_v16  ;;  %1514 = vmatprep.subr.bf16.mxu0 %v1209_v60 }
 0x22f   : > { %v1195_v61 = vsel %vm1035_vm14, %v1001_v4, %v1459_v40  ;;  %v1269_v56 = vunpack.c.0.s8 %v1268_v20 }
 0x230   : > { %v1193_v44 = vsel %vm1033_vm0, %v2467_v33, %v1457_v37  ;;  %v1213_v23 = vpack.c.bf16 %v1195_v61, %v1194_v43 }
 0x231   : > { %v1212_v46 = vpack.c.bf16 %v1193_v44, %v1192_v50  ;;  %v1272_v11 = vsub.s32 %v1269_v56, %v1220_v17 }
 0x235   : > { %1515 = vmatpush3.bf16.xpose.msra.mxu0 %v1201_v10  ;;  %v1217_v10 = vpop.permute.xlu0 %1216 }
 0x236   : > { %1516 = vmatprep.subr.bf16.mxu0 %v1210_v7  ;;  %v1222_v53 = vrot.slane %v1217_v10, %v1221_v25 }
 0x23d   : > { %1517 = vmatpush3.bf16.xpose.msra.mxu0 %v1202_v39 }
 0x23e   : > { %1518 = vmatprep.subr.bf16.mxu0 %v1211_v5 }
 0x245   : > { %1519 = vmatpush3.bf16.xpose.msra.mxu0 %v1203_v57 }
 0x246   : > { %1520 = vmatprep.subr.bf16.mxu0 %v1212_v46 }
 0x24d   : > { %1521 = vmatpush3.bf16.xpose.msra.mxu0 %v1204_v63 }
 0x24e   : > { %1522 = vmatprep.subr.bf16.mxu0 %v1213_v23 }
 0x255   : > { %1523 = vmatpush3.bf16.xpose.msra.mxu0 %v1205_v42 }
 0x25c   : > { %1525 = vmatmul.mubr.bf16.vlgmr.msra.gmra.mrb[32].mxu0 %v2244_v54 }
 0x32f   : > { %v1257_v57 = vpop.f32.mrb[32].mxu0 }
 0x330   : > { %v1258_v15 = vadd.f32 %v1257_v57, %v1222_v53  ;;  %v1259_v1 = vpop.f32.mrb[33].mxu0 }
 0x331   : > { %v1260_v39 = vadd.f32 %v1259_v1, %v1222_v53  ;;  %v1261_v36 = vpop.f32.mrb[34].mxu0 }
 0x332   : > { %v1262_v62 = vpop.f32.mrb[35].mxu0 }
 0x333   : > { %v1266_v54 = vcombine.low %v1258_v15, %v1260_v39 }
 0x335   : > { %v1273_v42 = vrot.slane %v1266_v54, %v1272_v11 }
 0x337   : > { %v1280_v47 = vrot.slane %v1273_v42, %v1272_v11 }
 0x339   : > { %1286 = vst.msk [vmem:[%s274_s18] sm:$0x3] %vm1284_vm1, %v1280_v47 }
 0x33a   : > { %1803 = shalt.err (!%p1800_p3)
}
 0x33b   : > { %s1804_s16 = scalar_lea.hbm %s2524_s22, 32  ;;  %s1808_s14 = scalar_lea.hbm %s2573_s7, 64 }
 0x33c   : > { %p1805_p4 = scmp.ne.s32.totalorder %s2524_s22, %s1804_s16  ;;  %p1809_p9 = scmp.lt.u32.totalorder %s2524_s22, %s2573_s7 }
 0x33d   : > { %p1810_p10 = scmp.lt.u32.totalorder %s1808_s14, %s1804_s16  ;;  %p1812_p12 = scmp.lt.u32.totalorder %s1804_s16, %s2524_s22 }
 0x33e   : > { %p1806_p7 = pnand %p1805_p4, %p1935_p5 }
 0x33f   : > { %p1811_p11 = por %p1810_p10, %p1809_p9 }
 0x340   : > { %p1807_p8 = pneg %p1806_p7 }
 0x341   : > { %p1813_p13 = por %p1812_p12, %p1811_p11 }
 0x343   : > { %p1814_p0 = pnand %p1813_p13, %p1807_p8 }
 0x345   : > { %1817 = shalt.err (!%p1814_p0)
}
 0x346   : > { %1610 = dma.vmem_to_hbm [thread:$0]  (%p1935_p5), %s2526_s19, 32, %s2524_s22, %s1288_s23  }
 0x347 PF: > { %p1616_p1 = scmp.ge.s32.totalorder %s1852_s29, 2  ;;  %s1314_s18 = sand.u32 1, %s1840_s26  }
 0x348   : > { %s1315_s20 = scalar_lea.sflag [#allocation4], %s1314_s18 }
 0x349   : > { %p1613_p2 = pnand %p1616_p1, %p1939_p6 }
 0x34b   : > { %1835 = dma.done.wait (!%p1613_p2), %s1315_s20, 32  }
 0x34c   : > { %1837 = vsyncadd (!%p1613_p2), %s1315_s20, 4294967264  ;;  %p19_p3 = scmp.ge.s32.totalorder %s1923_s8, 4   ;;  %s2576_s26 = smov %s1844_s27 }
 0x34d   : > { %s2577_s27 = smov %s1848_s28  ;;  %s2578_s28 = smov %s1933_s11 }
 0x34e   : > { %s2579_s29 = smov %s1923_s8  ;;  %21 = sbr.rel (!%p19_p3) target bundleno = 6 (0x6), region = 83 }
 0x355   :  { %1320 = vsyncpa [#allocation4], 1 }
 0x356   :  { %1322 = vsyncpa [#allocation4 + $0x1], 1 }

</bundles_post_ra>
